<compile_context>
chip_gen: v7x
topology: tpu7x:2x2x1
jax: 0.10.0
libtpu: 0.0.40
codegen_flags: <defaults>
</compile_context>

<pallas_src>
import functools
import math

import jax
import jax.numpy as jnp
from jax.experimental import pallas as pl
from jax.experimental.pallas import tpu as pltpu

_INV_SQRT2 = 1.0 / math.sqrt(2.0)
_SQRT_2_OVER_PI = math.sqrt(2.0 / math.pi)


def _round_up(n, m):
    return ((n + m - 1) // m) * m


def _vmem_capacity_bytes():
    """Per-TensorCore VMEM capacity; conservative 64 MiB if undetectable."""
    try:
        info = pltpu.get_tpu_info()
        cap = getattr(info, "vmem_capacity_bytes", None)
        if cap:
            return int(cap)
    except Exception:
        pass
    return 64 * 2 ** 20  # v7x per-TC size; safe lower bound on v5e/v6e too


def _choose_tm(m_rows, footprint, vmem_budget):
    # Largest row tile that fits the per-generation VMEM budget, keeping at
    # least 2 grid steps when the row count allows (pipelining + megacore
    # sharding across v7x's two TensorCores).
    for cand in (512, 256, 128):
        if m_rows >= 2 * cand and footprint(cand) <= vmem_budget:
            return cand
    # Small-M fallback: single tile, 16-row aligned (bf16 sublane packing)
    # when possible, never overshooting the 8-aligned row count.
    cand = min(128, _round_up(m_rows, 16))
    cand = min(cand, _round_up(m_rows, 8))
    while cand > 16 and footprint(cand) > vmem_budget:
        cand = _round_up(cand // 2, 16)
    return max(cand, 8)


def _projection_head_kernel(x_ref, w1_ref, w2_ref, consts_ref, o_ref, *,
                            eps, approximate):
    # x_ref: (tm, E) streamed dtype     w1_ref: (E, P) bf16   w2_ref: (P, P) bf16
    # consts_ref: (4, P) f32 = [b1; b2; gamma; beta]          o_ref: (tm, P)
    b1 = consts_ref[0:1, :]
    b2 = consts_ref[1:2, :]
    gamma = consts_ref[2:3, :]
    beta = consts_ref[3:4, :]

    # cast the streamed x tile in-register (each element visited exactly once)
    xb = x_ref[...].astype(w1_ref.dtype)

    # projection = x @ W1 + b1   (MXU, bf16 operands, f32 accumulation)
    projected = jnp.dot(xb, w1_ref[...],
                        preferred_element_type=jnp.float32) + b1

    if approximate:
        # tanh-approx GELU: tanh runs on the EUP (frees VALU slots on v6e/v7x)
        inner = _SQRT_2_OVER_PI * (projected
                                   + 0.044715 * projected * projected * projected)
        g = 0.5 * projected * (1.0 + jnp.tanh(inner))
    else:
        # exact erf GELU (torch.nn.GELU() default semantics)
        g = 0.5 * projected * (1.0 + jax.lax.erf(projected * _INV_SQRT2))

    # fc = gelu @ W2 + b2        (MXU)
    h = jnp.dot(g.astype(w2_ref.dtype), w2_ref[...],
                preferred_element_type=jnp.float32) + b2

    # dropout: identity in eval mode
    # TODO(synk): training-mode dropout (pltpu.prng_seed / prng_random_bits) not implemented.
    y = h + projected                       # residual

    # LayerNorm over the projection dim (f32, biased variance, eps inside rsqrt)
    mean = jnp.mean(y, axis=-1, keepdims=True)
    centered = y - mean
    var = jnp.mean(centered * centered, axis=-1, keepdims=True)
    out = centered * jax.lax.rsqrt(var + eps) * gamma + beta

    o_ref[...] = out.astype(o_ref.dtype)


def projection_head(x, w1, b1, w2, b2, gamma, beta, *,
                    eps=1e-5, mxu_dtype=jnp.bfloat16, gelu_approximate=False,
                    out_dtype=None, tm=None):
    """x: [..., E] -> [..., P].  Params float32; matmuls run on the MXU in
    `mxu_dtype` with float32 accumulation; epilogue (GELU/residual/LN) in f32."""
    orig_shape = x.shape
    E = orig_shape[-1]
    P = w1.shape[1]
    out_dtype = x.dtype if out_dtype is None else out_dtype

    x2d = x.reshape(-1, E)          # streamed as-is; cast to bf16 inside the kernel
    M = x2d.shape[0]

    mxu_bytes = jnp.dtype(mxu_dtype).itemsize
    x_bytes = jnp.dtype(x2d.dtype).itemsize
    out_bytes = jnp.dtype(out_dtype).itemsize

    vmem_budget = int(0.85 * _vmem_capacity_bytes())   # ~15% headroom

    def footprint(tile_m, resident_bufs=1):
        return (2 * tile_m * E * x_bytes                      # x tiles (double-buffered)
                + 2 * tile_m * P * out_bytes                  # output tiles (double-buffered)
                + resident_bufs * (E * P + P * P) * mxu_bytes # resident weights
                + resident_bufs * 4 * P * 4                   # folded bias / LN params
                + tile_m * E * mxu_bytes                      # in-register bf16 copy of x tile
                + 6 * tile_m * P * 4)                         # live f32 intermediates

    if tm is None:
        tm = _choose_tm(M, footprint, vmem_budget)
    grid_m = pl.cdiv(M, tm)         # partial last tile handled by Pallas masking

    # TODO(synk): if the resident weights alone exceed ~half of VMEM (P in the
    # multi-K range), add a K/N-tiled grid axis with a pl.when-guarded f32
    # accumulator instead of keeping both full weights resident.

    vmem_limit = int(min(vmem_budget,
                         max(2 * footprint(tm, resident_bufs=2), 16 * 2 ** 20)))

    # one-time casts of the grid-resident MXU operands
    w1c = w1.astype(mxu_dtype)
    w2c = w2.astype(mxu_dtype)
    consts = jnp.stack([b1, b2, gamma, beta], axis=0).astype(jnp.float32)  # (4, P)

    cost = pl.CostEstimate(
        flops=2 * M * E * P + 2 * M * P * P + 10 * M * P,
        transcendentals=M * P,
        bytes_accessed=(M * E * x_bytes + (E * P + P * P) * mxu_bytes
                        + 4 * P * 4 + M * P * out_bytes),
    )

    kernel = functools.partial(_projection_head_kernel, eps=eps,
                               approximate=gelu_approximate)

    def build(single_buffer_consts):
        const_kw = dict(pipeline_mode=pl.Buffered(1)) if single_buffer_consts else {}
        in_specs = [
            pl.BlockSpec((tm, E), lambda i: (i, 0)),               # x rows (streamed)
            pl.BlockSpec((E, P), lambda i: (0, 0), **const_kw),    # W1 (resident)
            pl.BlockSpec((P, P), lambda i: (0, 0), **const_kw),    # W2 (resident)
            pl.BlockSpec((4, P), lambda i: (0, 0), **const_kw),    # b1/b2/gamma/beta
        ]
        return pl.pallas_call(
            kernel,
            out_shape=jax.ShapeDtypeStruct((M, P), out_dtype),
            grid_spec=pltpu.PrefetchScalarGridSpec(
                num_scalar_prefetch=0,
                grid=(grid_m,),
                in_specs=in_specs,
                out_specs=pl.BlockSpec((tm, P), lambda i: (i, 0)),
            ),
            compiler_params=pltpu.CompilerParams(
                dimension_semantics=("parallel",),
                vmem_limit_bytes=vmem_limit),
            cost_estimate=cost,
        )

    try:
        out = build(True)(x2d, w1c, w2c, consts)
    except Exception:
        # Compatibility fallback: some JAX builds reject pipeline_mode /
        # Buffered(1) on top-level BlockSpecs; default double-buffering is
        # semantically identical, just uses more VMEM.
        out = build(False)(x2d, w1c, w2c, consts)

    return out.reshape(*orig_shape[:-1], P)


def _init_params(key, embedding_dim, projection_dim):
    # Deterministic synthetic init (PyTorch-Linear-like uniform ranges).
    k1, k2, k3, k4 = jax.random.split(key, 4)
    lim1 = 1.0 / math.sqrt(embedding_dim)
    lim2 = 1.0 / math.sqrt(projection_dim)
    w1 = jax.random.uniform(k1, (embedding_dim, projection_dim),
                            jnp.float32, -lim1, lim1)
    b1 = jax.random.uniform(k2, (projection_dim,), jnp.float32, -lim1, lim1)
    w2 = jax.random.uniform(k3, (projection_dim, projection_dim),
                            jnp.float32, -lim2, lim2)
    b2 = jax.random.uniform(k4, (projection_dim,), jnp.float32, -lim2, lim2)
    gamma = jnp.ones((projection_dim,), jnp.float32)
    beta = jnp.zeros((projection_dim,), jnp.float32)
    return w1, b1, w2, b2, gamma, beta


if __name__ == "__main__":
    batch, seq, embedding_dim, projection_dim = 2, 8, 32, 128

    key = jax.random.PRNGKey(0)
    kx, kp = jax.random.split(key)
    x = jax.random.normal(kx, (batch, seq, embedding_dim), jnp.float32)
    w1, b1, w2, b2, gamma, beta = _init_params(kp, embedding_dim, projection_dim)

    out = projection_head(x, w1, b1, w2, b2, gamma, beta)
    out = jax.block_until_ready(out)
    assert out.shape == (batch, seq, projection_dim)

    # Pure-JAX references.
    def reference(dt):
        xc = x.reshape(-1, embedding_dim).astype(dt)
        proj = jnp.dot(xc, w1.astype(dt),
                       preferred_element_type=jnp.float32) + b1
        g = 0.5 * proj * (1.0 + jax.lax.erf(proj * _INV_SQRT2))
        h = jnp.dot(g.astype(dt), w2.astype(dt),
                    preferred_element_type=jnp.float32) + b2
        y = h + proj
        mu = y.mean(-1, keepdims=True)
        var = ((y - mu) ** 2).mean(-1, keepdims=True)
        o = (y - mu) / jnp.sqrt(var + 1e-5) * gamma + beta
        return o.reshape(batch, seq, projection_dim)

    ref_bf16 = reference(jnp.bfloat16)   # mirrors the kernel's MXU numerics
    ref_f32 = reference(jnp.float32)     # exact torch-style f32 reference

    assert jnp.allclose(out, ref_bf16, atol=1e-3, rtol=1e-3)
    assert jnp.allclose(out, ref_f32, atol=2e-2, rtol=2e-2)
    print("KERNEL_OK")
</pallas_src>

<mosaic_0001>
module attributes {stable_mosaic.version = 11 : i64} {
  func.func @_projection_head_kernel(%arg0: i32, %arg1: memref<16x32xf32, #tpu.memory_space<vmem>>, %arg2: memref<32x128xbf16, #tpu.memory_space<vmem>>, %arg3: memref<128x128xbf16, #tpu.memory_space<vmem>>, %arg4: memref<4x128xf32, #tpu.memory_space<vmem>>, %arg5: memref<16x128xf32, #tpu.memory_space<vmem>>) attributes {dimension_semantics = [#tpu.dimension_semantics<parallel>], iteration_bounds = array<i64: 1>, scalar_prefetch = 0 : i64, scratch_operands = 0 : i64, tpu.core_type = #tpu.core_type<tc>, window_params = [{transform_indices = @transform_0, window_bounds = array<i64: 16, 32>}, {pipeline_mode = #tpu.pipeline_mode<synchronous>, transform_indices = @transform_1, window_bounds = array<i64: 32, 128>}, {pipeline_mode = #tpu.pipeline_mode<synchronous>, transform_indices = @transform_2, window_bounds = array<i64: 128, 128>}, {pipeline_mode = #tpu.pipeline_mode<synchronous>, transform_indices = @transform_3, window_bounds = array<i64: 4, 128>}, {transform_indices = @transform_4, window_bounds = array<i64: 16, 128>}]} {
    %c0 = arith.constant 0 : index
    %c0_0 = arith.constant 0 : index
    %0 = vector.load %arg4[%c0, %c0_0] : memref<4x128xf32, #tpu.memory_space<vmem>>, vector<1x128xf32>
    %c1 = arith.constant 1 : index
    %c0_1 = arith.constant 0 : index
    %1 = vector.load %arg4[%c1, %c0_1] : memref<4x128xf32, #tpu.memory_space<vmem>>, vector<1x128xf32>
    %c2 = arith.constant 2 : index
    %c0_2 = arith.constant 0 : index
    %2 = vector.load %arg4[%c2, %c0_2] : memref<4x128xf32, #tpu.memory_space<vmem>>, vector<1x128xf32>
    %c3 = arith.constant 3 : index
    %c0_3 = arith.constant 0 : index
    %3 = vector.load %arg4[%c3, %c0_3] : memref<4x128xf32, #tpu.memory_space<vmem>>, vector<1x128xf32>
    %c0_4 = arith.constant 0 : index
    %c0_5 = arith.constant 0 : index
    %4 = vector.load %arg1[%c0_4, %c0_5] : memref<16x32xf32, #tpu.memory_space<vmem>>, vector<16x32xf32>
    %5 = arith.truncf %4 : vector<16x32xf32> to vector<16x32xbf16>
    %c0_6 = arith.constant 0 : index
    %c0_7 = arith.constant 0 : index
    %6 = vector.load %arg2[%c0_6, %c0_7] : memref<32x128xbf16, #tpu.memory_space<vmem>>, vector<32x128xbf16>
    %cst = arith.constant dense<0.000000e+00> : vector<16x128xf32>
    %7 = tpu.matmul %5, %6, %cst {dimension_numbers = #tpu.dot_dimension_numbers<[1], [0], [0], [1], [0, 0, 1, 1], [], []>} : vector<16x32xbf16>, vector<32x128xbf16>, vector<16x128xf32> -> vector<16x128xf32>
    %8 = vector.broadcast %0 : vector<1x128xf32> to vector<16x128xf32>
    %9 = arith.addf %7, %8 : vector<16x128xf32>
    %cst_8 = arith.constant 5.000000e-01 : f32
    %10 = vector.broadcast %cst_8 : f32 to vector<16x128xf32>
    %11 = arith.mulf %10, %9 : vector<16x128xf32>
    %cst_9 = arith.constant 0.707106769 : f32
    %12 = vector.broadcast %cst_9 : f32 to vector<16x128xf32>
    %13 = arith.mulf %9, %12 : vector<16x128xf32>
    %14 = math.erf %13 : vector<16x128xf32>
    %cst_10 = arith.constant 1.000000e+00 : f32
    %15 = vector.broadcast %cst_10 : f32 to vector<16x128xf32>
    %16 = arith.addf %15, %14 : vector<16x128xf32>
    %17 = arith.mulf %11, %16 : vector<16x128xf32>
    %18 = arith.truncf %17 : vector<16x128xf32> to vector<16x128xbf16>
    %c0_11 = arith.constant 0 : index
    %c0_12 = arith.constant 0 : index
    %19 = vector.load %arg3[%c0_11, %c0_12] : memref<128x128xbf16, #tpu.memory_space<vmem>>, vector<128x128xbf16>
    %cst_13 = arith.constant dense<0.000000e+00> : vector<16x128xf32>
    %20 = tpu.matmul %18, %19, %cst_13 {dimension_numbers = #tpu.dot_dimension_numbers<[1], [0], [0], [1], [0, 0, 1, 1], [], []>} : vector<16x128xbf16>, vector<128x128xbf16>, vector<16x128xf32> -> vector<16x128xf32>
    %21 = vector.broadcast %1 : vector<1x128xf32> to vector<16x128xf32>
    %22 = arith.addf %20, %21 : vector<16x128xf32>
    %23 = arith.addf %22, %9 : vector<16x128xf32>
    %cst_14 = arith.constant dense<0.000000e+00> : vector<16xf32>
    %24 = vector.multi_reduction <add>, %23, %cst_14 [1] : vector<16x128xf32> to vector<16xf32>
    %25 = vector.shape_cast %24 : vector<16xf32> to vector<16x1xf32>
    %cst_15 = arith.constant 1.280000e+02 : f32
    %26 = vector.broadcast %cst_15 : f32 to vector<16x1xf32>
    %27 = arith.divf %25, %26 : vector<16x1xf32>
    %28 = vector.broadcast %27 : vector<16x1xf32> to vector<16x128xf32>
    %29 = arith.subf %23, %28 : vector<16x128xf32>
    %30 = arith.mulf %29, %29 : vector<16x128xf32>
    %cst_16 = arith.constant dense<0.000000e+00> : vector<16xf32>
    %31 = vector.multi_reduction <add>, %30, %cst_16 [1] : vector<16x128xf32> to vector<16xf32>
    %32 = vector.shape_cast %31 : vector<16xf32> to vector<16x1xf32>
    %cst_17 = arith.constant 1.280000e+02 : f32
    %33 = vector.broadcast %cst_17 : f32 to vector<16x1xf32>
    %34 = arith.divf %32, %33 : vector<16x1xf32>
    %cst_18 = arith.constant 9.99999974E-6 : f32
    %35 = vector.broadcast %cst_18 : f32 to vector<16x1xf32>
    %36 = arith.addf %34, %35 : vector<16x1xf32>
    %37 = math.rsqrt %36 : vector<16x1xf32>
    %38 = vector.broadcast %37 : vector<16x1xf32> to vector<16x128xf32>
    %39 = arith.mulf %29, %38 : vector<16x128xf32>
    %40 = vector.broadcast %2 : vector<1x128xf32> to vector<16x128xf32>
    %41 = arith.mulf %39, %40 : vector<16x128xf32>
    %42 = vector.broadcast %3 : vector<1x128xf32> to vector<16x128xf32>
    %43 = arith.addf %41, %42 : vector<16x128xf32>
    %c0_19 = arith.constant 0 : index
    %c0_20 = arith.constant 0 : index
    %44 = vector.load %arg5[%c0_19, %c0_20] : memref<16x128xf32, #tpu.memory_space<vmem>>, vector<16x128xf32>
    tpu.vector_store %arg5[%c0_19, %c0_20], %43 {strides = array<i32>} : memref<16x128xf32, #tpu.memory_space<vmem>>, vector<16x128xf32>,
    return
  }
  func.func @transform_0(%arg0: i32) -> (i32, i32) {
    %c0_i32 = arith.constant 0 : i32
    %c0_i32_0 = arith.constant 0 : i32
    return %arg0, %c0_i32 : i32, i32
  }
  func.func @transform_1(%arg0: i32) -> (i32, i32) {
    %c0_i32 = arith.constant 0 : i32
    %c0_i32_0 = arith.constant 0 : i32
    %c0_i32_1 = arith.constant 0 : i32
    return %c0_i32, %c0_i32_0 : i32, i32
  }
  func.func @transform_2(%arg0: i32) -> (i32, i32) {
    %c0_i32 = arith.constant 0 : i32
    %c0_i32_0 = arith.constant 0 : i32
    %c0_i32_1 = arith.constant 0 : i32
    return %c0_i32, %c0_i32_0 : i32, i32
  }
  func.func @transform_3(%arg0: i32) -> (i32, i32) {
    %c0_i32 = arith.constant 0 : i32
    %c0_i32_0 = arith.constant 0 : i32
    %c0_i32_1 = arith.constant 0 : i32
    return %c0_i32, %c0_i32_0 : i32, i32
  }
  func.func @transform_4(%arg0: i32) -> (i32, i32) {
    %c0_i32 = arith.constant 0 : i32
    %c0_i32_0 = arith.constant 0 : i32
    return %arg0, %c0_i32 : i32, i32
  }
}

module attributes {stable_mosaic.version = 11 : i64} {
  func.func @_projection_head_kernel(%arg0: i32, %arg1: memref<16x32xf32, #tpu.memory_space<vmem>>, %arg2: memref<32x128xbf16, #tpu.memory_space<vmem>>, %arg3: memref<128x128xbf16, #tpu.memory_space<vmem>>, %arg4: memref<4x128xf32, #tpu.memory_space<vmem>>, %arg5: memref<16x128xf32, #tpu.memory_space<vmem>>) attributes {dimension_semantics = [#tpu.dimension_semantics<parallel>], iteration_bounds = array<i64: 1>, scalar_prefetch = 0 : i64, scratch_operands = 0 : i64, tpu.core_type = #tpu.core_type<tc>, window_params = [{transform_indices = @transform_0, window_bounds = array<i64: 16, 32>}, {pipeline_mode = #tpu.pipeline_mode<synchronous>, transform_indices = @transform_1, window_bounds = array<i64: 32, 128>}, {pipeline_mode = #tpu.pipeline_mode<synchronous>, transform_indices = @transform_2, window_bounds = array<i64: 128, 128>}, {pipeline_mode = #tpu.pipeline_mode<synchronous>, transform_indices = @transform_3, window_bounds = array<i64: 4, 128>}, {transform_indices = @transform_4, window_bounds = array<i64: 16, 128>}]} {
    %c0 = arith.constant 0 : index
    %c0_0 = arith.constant 0 : index
    %0 = vector.load %arg4[%c0, %c0_0] : memref<4x128xf32, #tpu.memory_space<vmem>>, vector<1x128xf32>
    %c1 = arith.constant 1 : index
    %c0_1 = arith.constant 0 : index
    %1 = vector.load %arg4[%c1, %c0_1] : memref<4x128xf32, #tpu.memory_space<vmem>>, vector<1x128xf32>
    %c2 = arith.constant 2 : index
    %c0_2 = arith.constant 0 : index
    %2 = vector.load %arg4[%c2, %c0_2] : memref<4x128xf32, #tpu.memory_space<vmem>>, vector<1x128xf32>
    %c3 = arith.constant 3 : index
    %c0_3 = arith.constant 0 : index
    %3 = vector.load %arg4[%c3, %c0_3] : memref<4x128xf32, #tpu.memory_space<vmem>>, vector<1x128xf32>
    %c0_4 = arith.constant 0 : index
    %c0_5 = arith.constant 0 : index
    %4 = vector.load %arg1[%c0_4, %c0_5] : memref<16x32xf32, #tpu.memory_space<vmem>>, vector<16x32xf32>
    %5 = arith.truncf %4 : vector<16x32xf32> to vector<16x32xbf16>
    %c0_6 = arith.constant 0 : index
    %c0_7 = arith.constant 0 : index
    %6 = vector.load %arg2[%c0_6, %c0_7] : memref<32x128xbf16, #tpu.memory_space<vmem>>, vector<32x128xbf16>
    %cst = arith.constant dense<0.000000e+00> : vector<16x128xf32>
    %7 = tpu.matmul %5, %6, %cst {dimension_numbers = #tpu.dot_dimension_numbers<[1], [0], [0], [1], [0, 0, 1, 1], [], []>} : vector<16x32xbf16>, vector<32x128xbf16>, vector<16x128xf32> -> vector<16x128xf32>
    %8 = vector.broadcast %0 : vector<1x128xf32> to vector<16x128xf32>
    %9 = arith.addf %7, %8 : vector<16x128xf32>
    %cst_8 = arith.constant 5.000000e-01 : f32
    %10 = vector.broadcast %cst_8 : f32 to vector<16x128xf32>
    %11 = arith.mulf %10, %9 : vector<16x128xf32>
    %cst_9 = arith.constant 0.707106769 : f32
    %12 = vector.broadcast %cst_9 : f32 to vector<16x128xf32>
    %13 = arith.mulf %9, %12 : vector<16x128xf32>
    %14 = math.erf %13 : vector<16x128xf32>
    %cst_10 = arith.constant 1.000000e+00 : f32
    %15 = vector.broadcast %cst_10 : f32 to vector<16x128xf32>
    %16 = arith.addf %15, %14 : vector<16x128xf32>
    %17 = arith.mulf %11, %16 : vector<16x128xf32>
    %18 = arith.truncf %17 : vector<16x128xf32> to vector<16x128xbf16>
    %c0_11 = arith.constant 0 : index
    %c0_12 = arith.constant 0 : index
    %19 = vector.load %arg3[%c0_11, %c0_12] : memref<128x128xbf16, #tpu.memory_space<vmem>>, vector<128x128xbf16>
    %cst_13 = arith.constant dense<0.000000e+00> : vector<16x128xf32>
    %20 = tpu.matmul %18, %19, %cst_13 {dimension_numbers = #tpu.dot_dimension_numbers<[1], [0], [0], [1], [0, 0, 1, 1], [], []>} : vector<16x128xbf16>, vector<128x128xbf16>, vector<16x128xf32> -> vector<16x128xf32>
    %21 = vector.broadcast %1 : vector<1x128xf32> to vector<16x128xf32>
    %22 = arith.addf %20, %21 : vector<16x128xf32>
    %23 = arith.addf %22, %9 : vector<16x128xf32>
    %cst_14 = arith.constant dense<0.000000e+00> : vector<16xf32>
    %24 = vector.multi_reduction <add>, %23, %cst_14 [1] : vector<16x128xf32> to vector<16xf32>
    %25 = vector.shape_cast %24 : vector<16xf32> to vector<16x1xf32>
    %cst_15 = arith.constant 1.280000e+02 : f32
    %26 = vector.broadcast %cst_15 : f32 to vector<16x1xf32>
    %27 = arith.divf %25, %26 : vector<16x1xf32>
    %28 = vector.broadcast %27 : vector<16x1xf32> to vector<16x128xf32>
    %29 = arith.subf %23, %28 : vector<16x128xf32>
    %30 = arith.mulf %29, %29 : vector<16x128xf32>
    %cst_16 = arith.constant dense<0.000000e+00> : vector<16xf32>
    %31 = vector.multi_reduction <add>, %30, %cst_16 [1] : vector<16x128xf32> to vector<16xf32>
    %32 = vector.shape_cast %31 : vector<16xf32> to vector<16x1xf32>
    %cst_17 = arith.constant 1.280000e+02 : f32
    %33 = vector.broadcast %cst_17 : f32 to vector<16x1xf32>
    %34 = arith.divf %32, %33 : vector<16x1xf32>
    %cst_18 = arith.constant 9.99999974E-6 : f32
    %35 = vector.broadcast %cst_18 : f32 to vector<16x1xf32>
    %36 = arith.addf %34, %35 : vector<16x1xf32>
    %37 = math.rsqrt %36 : vector<16x1xf32>
    %38 = vector.broadcast %37 : vector<16x1xf32> to vector<16x128xf32>
    %39 = arith.mulf %29, %38 : vector<16x128xf32>
    %40 = vector.broadcast %2 : vector<1x128xf32> to vector<16x128xf32>
    %41 = arith.mulf %39, %40 : vector<16x128xf32>
    %42 = vector.broadcast %3 : vector<1x128xf32> to vector<16x128xf32>
    %43 = arith.addf %41, %42 : vector<16x128xf32>
    %c0_19 = arith.constant 0 : index
    %c0_20 = arith.constant 0 : index
    %44 = vector.load %arg5[%c0_19, %c0_20] : memref<16x128xf32, #tpu.memory_space<vmem>>, vector<16x128xf32>
    tpu.vector_store %arg5[%c0_19, %c0_20], %43 {strides = array<i32>} : memref<16x128xf32, #tpu.memory_space<vmem>>, vector<16x128xf32>,
    return
  }
  func.func @transform_0(%arg0: i32) -> (i32, i32) {
    %c0_i32 = arith.constant 0 : i32
    %c0_i32_0 = arith.constant 0 : i32
    return %arg0, %c0_i32 : i32, i32
  }
  func.func @transform_1(%arg0: i32) -> (i32, i32) {
    %c0_i32 = arith.constant 0 : i32
    %c0_i32_0 = arith.constant 0 : i32
    %c0_i32_1 = arith.constant 0 : i32
    return %c0_i32, %c0_i32_0 : i32, i32
  }
  func.func @transform_2(%arg0: i32) -> (i32, i32) {
    %c0_i32 = arith.constant 0 : i32
    %c0_i32_0 = arith.constant 0 : i32
    %c0_i32_1 = arith.constant 0 : i32
    return %c0_i32, %c0_i32_0 : i32, i32
  }
  func.func @transform_3(%arg0: i32) -> (i32, i32) {
    %c0_i32 = arith.constant 0 : i32
    %c0_i32_0 = arith.constant 0 : i32
    %c0_i32_1 = arith.constant 0 : i32
    return %c0_i32, %c0_i32_0 : i32, i32
  }
  func.func @transform_4(%arg0: i32) -> (i32, i32) {
    %c0_i32 = arith.constant 0 : i32
    %c0_i32_0 = arith.constant 0 : i32
    return %arg0, %c0_i32 : i32, i32
  }
}

</mosaic_0001>

<bundles_post_ra>
// kernel: tpu_custom_call.1
= control target key start
LH: loop header
LB: loop body
LE: loop exit
PB: predicated region body
PF: predicated region fallthrough
CT: control target
= control target key end

     0   :  { %9 = vsyncpa [#allocation3], 0  ;;  %s593_s0 = inlined_call_operand.hbm [shape: f32[16,32], index: 0, kind: input, shape index: {}]   ;;  %s594_s1 = inlined_call_operand.hbm [shape: bf16[32,128], index: 1, kind: input, shape index: {}]   ;;  %s595_s2 = inlined_call_operand.hbm [shape: bf16[128,128], index: 2, kind: input, shape index: {}]   ;;  %s596_s3 = inlined_call_operand.vmem [shape: f32[4,128], index: 3, kind: input, shape index: {}]   ;;  %s597_s4 = inlined_call_operand.hbm [shape: f32[16,128], index: 4, kind: output, shape index: {}]  }
   0x1   :  { %10 = vsyncpa [#allocation6], 0 }
   0x2   :  { %11 = vsyncpa [#allocation4], 0  ;;  %s486_s15 = smov [#allocation5]   ;;  %s392_s19 = scalar_lea.hbm %s594_s1, 256 }
   0x3   :  { %s29_s16 = sshll.u32 %s486_s15, 4  ;;  %p393_p0 = scmp.ne.s32.totalorder %s594_s1, %s392_s19  ;;  %s30_s16 = int_to_ptr.vmem [resolvable:$true] %s29_s16 }
   0x4   :  { %p396_p1 = scmp.lt.u32.totalorder %s392_s19, %s594_s1 }
   0x6   :  { %p398_p2 = pnand %p396_p1, %p393_p0 }
   0x8   :  { %401 = shalt.err (!%p398_p2)
}
   0x9   :  { %s402_s24 = scalar_lea.vmem %s30_s16, 256  ;;  %p407_p4 = scmp.lt.s32.totalorder %s30_s16, %s30_s16 }
   0xa   :  { %p403_p3 = scmp.ne.s32.totalorder %s30_s16, %s402_s24  ;;  %p408_p5 = scmp.lt.s32.totalorder %s402_s24, %s402_s24 }
   0xc   :  { %p409_p6 = por %p408_p5, %p407_p4 }
   0xe   :  { %p410_p7 = pnand %p409_p6, %p403_p3 }
  0x10   :  { %413 = shalt.err (!%p410_p7)
}
  0x11   :  { %s487_s25 = smov 64   ;;  %s488_s26 = smov 4  }
  0x12   :  { %35 = dma.hbm_to_vmem [thread:$0]  %s594_s1, 256, %s30_s16, [#allocation6], %s487_s25, %s487_s25, %s488_s26  }
  0x13   :  { %s489_s29 = smov [#allocation2]   ;;  %s414_s7 = scalar_lea.hbm %s593_s0, 256 }
  0x14   :  { %s17_s30 = sshll.u32 %s489_s29, 4  ;;  %p415_p8 = scmp.ne.s32.totalorder %s593_s0, %s414_s7  ;;  %s18_s30 = int_to_ptr.vmem [resolvable:$true] %s17_s30 }
  0x15   :  { %p418_p9 = scmp.lt.u32.totalorder %s414_s7, %s593_s0 }
  0x17   :  { %p420_p10 = pnand %p418_p9, %p415_p8 }
  0x19   :  { %423 = shalt.err (!%p420_p10)
}
  0x1a   :  { %s424_s12 = scalar_lea.vmem %s18_s30, 256  ;;  %p429_p12 = scmp.lt.s32.totalorder %s18_s30, %s18_s30 }
  0x1b   :  { %p425_p11 = scmp.ne.s32.totalorder %s18_s30, %s424_s12  ;;  %p430_p13 = scmp.lt.s32.totalorder %s424_s12, %s424_s12 }
  0x1d   :  { %p431_p0 = por %p430_p13, %p429_p12 }
  0x1f   :  { %p432_p1 = pnand %p431_p0, %p425_p11 }
  0x21   :  { %435 = shalt.err (!%p432_p1)
}
  0x22   :  { %s490_s1 = smov 128   ;;  %s491_s13 = smov 8  }
  0x23   :  { %23 = dma.hbm_to_vmem [thread:$0]  %s593_s0, 256, %s18_s30, [#allocation3], %s490_s1, %s490_s1, %s491_s13  }
  0x24   :  { %s492_s16 = smov [#allocation7]   ;;  %s436_s20 = scalar_lea.hbm %s595_s2, 1024 }
  0x25   :  { %s41_s17 = sshll.u32 %s492_s16, 4  ;;  %p437_p2 = scmp.ne.s32.totalorder %s595_s2, %s436_s20  ;;  %s42_s17 = int_to_ptr.vmem [resolvable:$true] %s41_s17 }
  0x26   :  { %p440_p3 = scmp.lt.u32.totalorder %s436_s20, %s595_s2 }
  0x28   :  { %p442_p4 = pnand %p440_p3, %p437_p2 }
  0x2a   :  { %445 = shalt.err (!%p442_p4)
}
  0x2b   :  { %s446_s27 = scalar_lea.vmem %s42_s17, 1024  ;;  %p451_p6 = scmp.lt.s32.totalorder %s42_s17, %s42_s17 }
  0x2c   :  { %p447_p5 = scmp.ne.s32.totalorder %s42_s17, %s446_s27  ;;  %p452_p7 = scmp.lt.s32.totalorder %s446_s27, %s446_s27 }
  0x2e   :  { %p453_p8 = por %p452_p7, %p451_p6 }
  0x30   :  { %p454_p9 = pnand %p453_p8, %p447_p5 }
  0x32   :  { %457 = shalt.err (!%p454_p9)
}
  0x33   :  { %47 = dma.hbm_to_vmem [thread:$0]  %s595_s2, 1024, %s42_s17, [#allocation6], %s487_s25, %s487_s25, %s488_s26  }
  0x34   :  { %480 = dma.done.wait [#allocation3], 256  }
  0x35   :  { %481 = vsyncadd [#allocation3], 4294967040 }
  0x36   :  { %482 = dma.done.wait [#allocation6], 1280  }
  0x37   :  { %483 = vsyncadd [#allocation6], 4294966016  ;;  %v493_v0 = vmov 0.0   ;;  %vm494_vm0 = vmmov 0   ;;  %v374_v1 = vld [vmem:[#allocation5] sm:$0xff]   ;;  %v375_v2 = vld [vmem:[#allocation5 + $0x8] sm:$0xff]  }
  0x38   :  { %336 = vmatprep.subr.bf16.mxu0 %v493_v0  ;;  %340 = vmatprep.mubr.msk.bf16.mxu0 %vm494_vm0, %v493_v0  ;;  %v64_v3 = vld [vmem:[#allocation2] sm:$0xff]  ;;  %v65_v4 = vld [vmem:[#allocation2 + $0x8] sm:$0xff]  ;;  %vm87_vm1 = vcmask 261120   ;;  %v378_v8 = vld [vmem:[#allocation7 + $0x10] sm:$0xff]   ;;  %s495_s8 = smov [#allocation8]  }
  0x39   :  { %344 = vmatprep.subr.bf16.mxu1 %v493_v0  ;;  %360 = vmatprep.mubr.msk.bf16.mxu1 %vm494_vm0, %v493_v0  ;;  %v376_v5 = vld [vmem:[#allocation7] sm:$0xff]   ;;  %v377_v6 = vld [vmem:[#allocation7 + $0x8] sm:$0xff]   ;;  %v66_v7 = vpack.c.bf16 %v65_v4, %v64_v3  ;;  %v379_v9 = vld [vmem:[#allocation7 + $0x18] sm:$0xff]   ;;  %s296_s9 = sshll.u32 %s495_s8, 4  ;;  %s297_s9 = int_to_ptr.vmem [resolvable:$true] %s296_s9 }
  0x3a   :  { %337 = vmatpush3.bf16.msra.mxu0 %v374_v1  ;;  %345 = vmatpush3.bf16.msra.mxu1 %v376_v5  ;;  %v380_v10 = vld [vmem:[#allocation7 + $0x20] sm:$0xff]   ;;  %v381_v11 = vld [vmem:[#allocation7 + $0x28] sm:$0xff]   ;;  %v382_v12 = vld [vmem:[#allocation7 + $0x30] sm:$0xff]   ;;  %s458_s10 = scalar_lea.vmem %s297_s9, 256  ;;  %p463_p11 = scmp.lt.s32.totalorder %s297_s9, %s297_s9 }
  0x3b   :  { %338 = vmatprep.subr.bf16.mxu0 %v493_v0  ;;  %346 = vmatprep.subr.bf16.mxu1 %v493_v0  ;;  %v383_v13 = vld [vmem:[#allocation7 + $0x38] sm:$0xff]   ;;  %v309_v14 = vld [vmem:[%s596_s3] ss:$0 sm:$0xff]  ;;  %v313_v32 = vld [vmem:[%s596_s3 + $0x1] ss:$0 sm:$0xff]  ;;  %p459_p10 = scmp.ne.s32.totalorder %s297_s9, %s458_s10  ;;  %p464_p12 = scmp.lt.s32.totalorder %s458_s10, %s458_s10 }
  0x3c   :  { %v322_v56 = vld [vmem:[%s596_s3 + $0x2] ss:$0 sm:$0xff]  ;;  %v323_v58 = vld [vmem:[%s596_s3 + $0x3] ss:$0 sm:$0xff] }
  0x3d   :  { %p465_p13 = por %p464_p12, %p463_p11 }
  0x3e   :  { %339 = vmatpush3.bf16.msra.mxu0 %v375_v2  ;;  %347 = vmatpush3.bf16.msra.mxu1 %v377_v6 }
  0x3f   :  { %348 = vmatprep.subr.bf16.mxu1 %v493_v0  ;;  %p466_p0 = pnand %p465_p13, %p459_p10 }
  0x41   :  { %341 = vmatmul.mubr.msk.bf16.vlgmr.msra.gmra.mrb[0].mxu0 %vm87_vm1, %v66_v7 }
  0x42   :  { %349 = vmatpush3.bf16.msra.mxu1 %v378_v8 }
  0x43   :  { %350 = vmatprep.subr.bf16.mxu1 %v493_v0 }
  0x46   :  { %351 = vmatpush3.bf16.msra.mxu1 %v379_v9 }
  0x47   :  { %352 = vmatprep.subr.bf16.mxu1 %v493_v0 }
  0x4a   :  { %353 = vmatpush3.bf16.msra.mxu1 %v380_v10 }
  0x4b   :  { %354 = vmatprep.subr.bf16.mxu1 %v493_v0 }
  0x4e   :  { %355 = vmatpush3.bf16.msra.mxu1 %v381_v11 }
  0x4f   :  { %356 = vmatprep.subr.bf16.mxu1 %v493_v0 }
  0x52   :  { %357 = vmatpush3.bf16.msra.mxu1 %v382_v12 }
  0x53   :  { %358 = vmatprep.subr.bf16.mxu1 %v493_v0 }
  0x56   :  { %359 = vmatpush3.bf16.msra.mxu1 %v383_v13 }
 0x114   :  { %v125_v15 = vpop.f32.mrb[0].mxu0 }
 0x115   :  { %v126_v16 = vadd.f32 %v309_v14, %v125_v15  ;;  %v342_v17 = vpop.f32.mrb[1].mxu0 }
 0x116   :  { %v128_v18 = vpop.f32.mrb[2].mxu0 }
 0x117   :  { %v134_v19 = vmul.f32 0.70710677, %v126_v16  ;;  %v129_v20 = vadd.f32 %v309_v14, %v128_v18  ;;  %v343_v21 = vpop.f32.mrb[3].mxu0  ;;  %v132_v26 = vmul.f32 0.5, %v126_v16 }
 0x119   :  { %384 = verf.f32 %v134_v19  ;;  %v135_v22 = vmul.f32 0.70710677, %v129_v20  ;;  %v133_v27 = vmul.f32 0.5, %v129_v20 }
 0x11b   :  { %386 = verf.f32 %v135_v22 }
 0x123   :  { %v385_v23 = vpop.eup %384 }
 0x124   :  { %v138_v24 = vadd.f32 1.0, %v385_v23 }
 0x125   :  { %v387_v25 = vpop.eup %386 }
 0x126   :  { %v139_v28 = vadd.f32 1.0, %v387_v25  ;;  %v140_v29 = vmul.f32 %v138_v24, %v132_v26 }
 0x128   :  { %v141_v30 = vmul.f32 %v139_v28, %v133_v27 }
 0x12a   :  { %v142_v31 = vpack.c.bf16 %v141_v30, %v140_v29 }
 0x12c   :  { %361 = vmatmul.mubr.bf16.vlgmr.msra.gmra.mrb[0].mxu1 %v142_v31 }
 0x1ff   :  { %v245_v33 = vpop.f32.mrb[0].mxu1 }
 0x200   :  { %v246_v34 = vadd.f32 %v313_v32, %v245_v33  ;;  %v362_v35 = vpop.f32.mrb[1].mxu1 }
 0x201   :  { %v248_v36 = vpop.f32.mrb[2].mxu1 }
 0x202   :  { %v249_v37 = vadd.f32 %v313_v32, %v248_v36  ;;  %v363_v38 = vpop.f32.mrb[3].mxu1  ;;  %v252_v39 = vadd.f32 %v246_v34, %v126_v16 }
 0x204   :  { %254 = vadd.xlane.f32.xlu0 %v252_v39  ;;  %v253_v40 = vadd.f32 %v249_v37, %v129_v20 }
 0x208   :  { %256 = vadd.xlane.f32.xlu0 %v253_v40 }
 0x291   :  { %v255_v41 = vpop.xlane.xlu0 %254 }
 0x292   :  { %v259_v42 = vmul.f32 0.0078125, %v255_v41 }
 0x294   :  { %v261_v43 = vsub.f32 %v252_v39, %v259_v42 }
 0x295   :  { %v257_v44 = vpop.xlane.xlu0 %256 }
 0x296   :  { %v260_v45 = vmul.f32 0.0078125, %v257_v44  ;;  %v263_v46 = vmul.f32 %v261_v43, %v261_v43 }
 0x298   :  { %v262_v47 = vsub.f32 %v253_v40, %v260_v45  ;;  %265 = vadd.xlane.f32.xlu1 %v263_v46 }
 0x29a   :  { %v264_v48 = vmul.f32 %v262_v47, %v262_v47 }
 0x29c   :  { %267 = vadd.xlane.f32.xlu1 %v264_v48 }
 0x325   :  { %v266_v49 = vpop.xlane.xlu1 %265 }
 0x326   :  { %v269_v50 = vmul.f32 0.0078125, %v266_v49 }
 0x328   :  { %v271_v51 = vadd.f32 1e-05, %v269_v50 }
 0x329   :  { %v268_v52 = vpop.xlane.xlu1 %267 }
 0x32a   :  { %388 = vrsqrt.f32 %v271_v51  ;;  %v270_v53 = vmul.f32 0.0078125, %v268_v52 }
 0x32c   :  { %v272_v54 = vadd.f32 1e-05, %v270_v53 }
 0x32e   :  { %390 = vrsqrt.f32 %v272_v54 }
 0x334   :  { %v389_v55 = vpop.eup %388 }
 0x335   :  { %v275_v57 = vmul.f32 %v389_v55, %v261_v43 }
 0x337   :  { %v281_v59 = vmul.f32 %v322_v56, %v275_v57 }
 0x338   :  { %v391_v60 = vpop.eup %390 }
 0x339   :  { %v276_v61 = vmul.f32 %v391_v60, %v262_v47  ;;  %v287_v62 = vadd.f32 %v323_v58, %v281_v59 }
 0x33b   :  { %v282_v63 = vmul.f32 %v322_v56, %v276_v61  ;;  %289 = vst [vmem:[#allocation8] sm:$0xff] %v287_v62 }
 0x33d   :  { %v288_v0 = vadd.f32 %v323_v58, %v282_v63 }
 0x33f   :  { %290 = vst [vmem:[#allocation8 + $0x8] sm:$0xff] %v288_v0 }
 0x340   :  { %469 = shalt.err (!%p466_p0)
}
 0x341   :  { %s470_s12 = scalar_lea.hbm %s597_s4, 256 }
 0x342   :  { %p471_p1 = scmp.ne.s32.totalorder %s597_s4, %s470_s12  ;;  %p474_p2 = scmp.lt.u32.totalorder %s470_s12, %s597_s4 }
 0x344   :  { %p476_p3 = pnand %p474_p2, %p471_p1 }
 0x346   :  { %479 = shalt.err (!%p476_p3)
}
 0x347   :  { %302 = dma.vmem_to_hbm [thread:$0]  %s297_s9, 256, %s597_s4, [#allocation4], %s490_s1, %s490_s1, %s491_s13  }
 0x348   :  { %484 = dma.done.wait [#allocation4], 256  }
 0x349   :  { %485 = vsyncadd [#allocation4], 4294967040 }
 0x34a   :  { %306 = vsyncpa [#allocation3], 1 }
 0x34b   :  { %307 = vsyncpa [#allocation6], 1 }
 0x34c   :  { %308 = vsyncpa [#allocation4], 1 }

// kernel: tpu_custom_call.1
= control target key start
LH: loop header
LB: loop body
LE: loop exit
PB: predicated region body
PF: predicated region fallthrough
CT: control target
= control target key end

     0   :  { %9 = vsyncpa [#allocation3], 0  ;;  %s593_s0 = inlined_call_operand.hbm [shape: f32[16,32], index: 0, kind: input, shape index: {}]   ;;  %s594_s1 = inlined_call_operand.hbm [shape: bf16[32,128], index: 1, kind: input, shape index: {}]   ;;  %s595_s2 = inlined_call_operand.hbm [shape: bf16[128,128], index: 2, kind: input, shape index: {}]   ;;  %s596_s3 = inlined_call_operand.vmem [shape: f32[4,128], index: 3, kind: input, shape index: {}]   ;;  %s597_s4 = inlined_call_operand.hbm [shape: f32[16,128], index: 4, kind: output, shape index: {}]  }
   0x1   :  { %10 = vsyncpa [#allocation6], 0 }
   0x2   :  { %11 = vsyncpa [#allocation4], 0  ;;  %s486_s15 = smov [#allocation5]   ;;  %s392_s19 = scalar_lea.hbm %s594_s1, 256 }
   0x3   :  { %s29_s16 = sshll.u32 %s486_s15, 4  ;;  %p393_p0 = scmp.ne.s32.totalorder %s594_s1, %s392_s19  ;;  %s30_s16 = int_to_ptr.vmem [resolvable:$true] %s29_s16 }
   0x4   :  { %p396_p1 = scmp.lt.u32.totalorder %s392_s19, %s594_s1 }
   0x6   :  { %p398_p2 = pnand %p396_p1, %p393_p0 }
   0x8   :  { %401 = shalt.err (!%p398_p2)
}
   0x9   :  { %s402_s24 = scalar_lea.vmem %s30_s16, 256  ;;  %p407_p4 = scmp.lt.s32.totalorder %s30_s16, %s30_s16 }
   0xa   :  { %p403_p3 = scmp.ne.s32.totalorder %s30_s16, %s402_s24  ;;  %p408_p5 = scmp.lt.s32.totalorder %s402_s24, %s402_s24 }
   0xc   :  { %p409_p6 = por %p408_p5, %p407_p4 }
   0xe   :  { %p410_p7 = pnand %p409_p6, %p403_p3 }
  0x10   :  { %413 = shalt.err (!%p410_p7)
}
  0x11   :  { %s487_s25 = smov 64   ;;  %s488_s26 = smov 4  }
  0x12   :  { %35 = dma.hbm_to_vmem [thread:$0]  %s594_s1, 256, %s30_s16, [#allocation6], %s487_s25, %s487_s25, %s488_s26  }
  0x13   :  { %s489_s29 = smov [#allocation2]   ;;  %s414_s7 = scalar_lea.hbm %s593_s0, 256 }
  0x14   :  { %s17_s30 = sshll.u32 %s489_s29, 4  ;;  %p415_p8 = scmp.ne.s32.totalorder %s593_s0, %s414_s7  ;;  %s18_s30 = int_to_ptr.vmem [resolvable:$true] %s17_s30 }
  0x15   :  { %p418_p9 = scmp.lt.u32.totalorder %s414_s7, %s593_s0 }
  0x17   :  { %p420_p10 = pnand %p418_p9, %p415_p8 }
  0x19   :  { %423 = shalt.err (!%p420_p10)
}
  0x1a   :  { %s424_s12 = scalar_lea.vmem %s18_s30, 256  ;;  %p429_p12 = scmp.lt.s32.totalorder %s18_s30, %s18_s30 }
  0x1b   :  { %p425_p11 = scmp.ne.s32.totalorder %s18_s30, %s424_s12  ;;  %p430_p13 = scmp.lt.s32.totalorder %s424_s12, %s424_s12 }
  0x1d   :  { %p431_p0 = por %p430_p13, %p429_p12 }
  0x1f   :  { %p432_p1 = pnand %p431_p0, %p425_p11 }
  0x21   :  { %435 = shalt.err (!%p432_p1)
}
  0x22   :  { %s490_s1 = smov 128   ;;  %s491_s13 = smov 8  }
  0x23   :  { %23 = dma.hbm_to_vmem [thread:$0]  %s593_s0, 256, %s18_s30, [#allocation3], %s490_s1, %s490_s1, %s491_s13  }
  0x24   :  { %s492_s16 = smov [#allocation7]   ;;  %s436_s20 = scalar_lea.hbm %s595_s2, 1024 }
  0x25   :  { %s41_s17 = sshll.u32 %s492_s16, 4  ;;  %p437_p2 = scmp.ne.s32.totalorder %s595_s2, %s436_s20  ;;  %s42_s17 = int_to_ptr.vmem [resolvable:$true] %s41_s17 }
  0x26   :  { %p440_p3 = scmp.lt.u32.totalorder %s436_s20, %s595_s2 }
  0x28   :  { %p442_p4 = pnand %p440_p3, %p437_p2 }
  0x2a   :  { %445 = shalt.err (!%p442_p4)
}
  0x2b   :  { %s446_s27 = scalar_lea.vmem %s42_s17, 1024  ;;  %p451_p6 = scmp.lt.s32.totalorder %s42_s17, %s42_s17 }
  0x2c   :  { %p447_p5 = scmp.ne.s32.totalorder %s42_s17, %s446_s27  ;;  %p452_p7 = scmp.lt.s32.totalorder %s446_s27, %s446_s27 }
  0x2e   :  { %p453_p8 = por %p452_p7, %p451_p6 }
  0x30   :  { %p454_p9 = pnand %p453_p8, %p447_p5 }
  0x32   :  { %457 = shalt.err (!%p454_p9)
}
  0x33   :  { %47 = dma.hbm_to_vmem [thread:$0]  %s595_s2, 1024, %s42_s17, [#allocation6], %s487_s25, %s487_s25, %s488_s26  }
  0x34   :  { %480 = dma.done.wait [#allocation3], 256  }
  0x35   :  { %481 = vsyncadd [#allocation3], 4294967040 }
  0x36   :  { %482 = dma.done.wait [#allocation6], 1280  }
  0x37   :  { %483 = vsyncadd [#allocation6], 4294966016  ;;  %v493_v0 = vmov 0.0   ;;  %vm494_vm0 = vmmov 0   ;;  %v374_v1 = vld [vmem:[#allocation5] sm:$0xff]   ;;  %v375_v2 = vld [vmem:[#allocation5 + $0x8] sm:$0xff]  }
  0x38   :  { %336 = vmatprep.subr.bf16.mxu0 %v493_v0  ;;  %340 = vmatprep.mubr.msk.bf16.mxu0 %vm494_vm0, %v493_v0  ;;  %v64_v3 = vld [vmem:[#allocation2] sm:$0xff]  ;;  %v65_v4 = vld [vmem:[#allocation2 + $0x8] sm:$0xff]  ;;  %vm87_vm1 = vcmask 261120   ;;  %v378_v8 = vld [vmem:[#allocation7 + $0x10] sm:$0xff]   ;;  %s495_s8 = smov [#allocation8]  }
  0x39   :  { %344 = vmatprep.subr.bf16.mxu1 %v493_v0  ;;  %360 = vmatprep.mubr.msk.bf16.mxu1 %vm494_vm0, %v493_v0  ;;  %v376_v5 = vld [vmem:[#allocation7] sm:$0xff]   ;;  %v377_v6 = vld [vmem:[#allocation7 + $0x8] sm:$0xff]   ;;  %v66_v7 = vpack.c.bf16 %v65_v4, %v64_v3  ;;  %v379_v9 = vld [vmem:[#allocation7 + $0x18] sm:$0xff]   ;;  %s296_s9 = sshll.u32 %s495_s8, 4  ;;  %s297_s9 = int_to_ptr.vmem [resolvable:$true] %s296_s9 }
  0x3a   :  { %337 = vmatpush3.bf16.msra.mxu0 %v374_v1  ;;  %345 = vmatpush3.bf16.msra.mxu1 %v376_v5  ;;  %v380_v10 = vld [vmem:[#allocation7 + $0x20] sm:$0xff]   ;;  %v381_v11 = vld [vmem:[#allocation7 + $0x28] sm:$0xff]   ;;  %v382_v12 = vld [vmem:[#allocation7 + $0x30] sm:$0xff]   ;;  %s458_s10 = scalar_lea.vmem %s297_s9, 256  ;;  %p463_p11 = scmp.lt.s32.totalorder %s297_s9, %s297_s9 }
  0x3b   :  { %338 = vmatprep.subr.bf16.mxu0 %v493_v0  ;;  %346 = vmatprep.subr.bf16.mxu1 %v493_v0  ;;  %v383_v13 = vld [vmem:[#allocation7 + $0x38] sm:$0xff]   ;;  %v309_v14 = vld [vmem:[%s596_s3] ss:$0 sm:$0xff]  ;;  %v313_v32 = vld [vmem:[%s596_s3 + $0x1] ss:$0 sm:$0xff]  ;;  %p459_p10 = scmp.ne.s32.totalorder %s297_s9, %s458_s10  ;;  %p464_p12 = scmp.lt.s32.totalorder %s458_s10, %s458_s10 }
  0x3c   :  { %v322_v56 = vld [vmem:[%s596_s3 + $0x2] ss:$0 sm:$0xff]  ;;  %v323_v58 = vld [vmem:[%s596_s3 + $0x3] ss:$0 sm:$0xff] }
  0x3d   :  { %p465_p13 = por %p464_p12, %p463_p11 }
  0x3e   :  { %339 = vmatpush3.bf16.msra.mxu0 %v375_v2  ;;  %347 = vmatpush3.bf16.msra.mxu1 %v377_v6 }
  0x3f   :  { %348 = vmatprep.subr.bf16.mxu1 %v493_v0  ;;  %p466_p0 = pnand %p465_p13, %p459_p10 }
  0x41   :  { %341 = vmatmul.mubr.msk.bf16.vlgmr.msra.gmra.mrb[0].mxu0 %vm87_vm1, %v66_v7 }
  0x42   :  { %349 = vmatpush3.bf16.msra.mxu1 %v378_v8 }
  0x43   :  { %350 = vmatprep.subr.bf16.mxu1 %v493_v0 }
  0x46   :  { %351 = vmatpush3.bf16.msra.mxu1 %v379_v9 }
  0x47   :  { %352 = vmatprep.subr.bf16.mxu1 %v493_v0 }
  0x4a   :  { %353 = vmatpush3.bf16.msra.mxu1 %v380_v10 }
  0x4b   :  { %354 = vmatprep.subr.bf16.mxu1 %v493_v0 }
  0x4e   :  { %355 = vmatpush3.bf16.msra.mxu1 %v381_v11 }
  0x4f   :  { %356 = vmatprep.subr.bf16.mxu1 %v493_v0 }
  0x52   :  { %357 = vmatpush3.bf16.msra.mxu1 %v382_v12 }
  0x53   :  { %358 = vmatprep.subr.bf16.mxu1 %v493_v0 }
  0x56   :  { %359 = vmatpush3.bf16.msra.mxu1 %v383_v13 }
 0x114   :  { %v125_v15 = vpop.f32.mrb[0].mxu0 }
 0x115   :  { %v126_v16 = vadd.f32 %v309_v14, %v125_v15  ;;  %v342_v17 = vpop.f32.mrb[1].mxu0 }
 0x116   :  { %v128_v18 = vpop.f32.mrb[2].mxu0 }
 0x117   :  { %v134_v19 = vmul.f32 0.70710677, %v126_v16  ;;  %v129_v20 = vadd.f32 %v309_v14, %v128_v18  ;;  %v343_v21 = vpop.f32.mrb[3].mxu0  ;;  %v132_v26 = vmul.f32 0.5, %v126_v16 }
 0x119   :  { %384 = verf.f32 %v134_v19  ;;  %v135_v22 = vmul.f32 0.70710677, %v129_v20  ;;  %v133_v27 = vmul.f32 0.5, %v129_v20 }
 0x11b   :  { %386 = verf.f32 %v135_v22 }
 0x123   :  { %v385_v23 = vpop.eup %384 }
 0x124   :  { %v138_v24 = vadd.f32 1.0, %v385_v23 }
 0x125   :  { %v387_v25 = vpop.eup %386 }
 0x126   :  { %v139_v28 = vadd.f32 1.0, %v387_v25  ;;  %v140_v29 = vmul.f32 %v138_v24, %v132_v26 }
 0x128   :  { %v141_v30 = vmul.f32 %v139_v28, %v133_v27 }
 0x12a   :  { %v142_v31 = vpack.c.bf16 %v141_v30, %v140_v29 }
 0x12c   :  { %361 = vmatmul.mubr.bf16.vlgmr.msra.gmra.mrb[0].mxu1 %v142_v31 }
 0x1ff   :  { %v245_v33 = vpop.f32.mrb[0].mxu1 }
 0x200   :  { %v246_v34 = vadd.f32 %v313_v32, %v245_v33  ;;  %v362_v35 = vpop.f32.mrb[1].mxu1 }
 0x201   :  { %v248_v36 = vpop.f32.mrb[2].mxu1 }
 0x202   :  { %v249_v37 = vadd.f32 %v313_v32, %v248_v36  ;;  %v363_v38 = vpop.f32.mrb[3].mxu1  ;;  %v252_v39 = vadd.f32 %v246_v34, %v126_v16 }
 0x204   :  { %254 = vadd.xlane.f32.xlu0 %v252_v39  ;;  %v253_v40 = vadd.f32 %v249_v37, %v129_v20 }
 0x208   :  { %256 = vadd.xlane.f32.xlu0 %v253_v40 }
 0x291   :  { %v255_v41 = vpop.xlane.xlu0 %254 }
 0x292   :  { %v259_v42 = vmul.f32 0.0078125, %v255_v41 }
 0x294   :  { %v261_v43 = vsub.f32 %v252_v39, %v259_v42 }
 0x295   :  { %v257_v44 = vpop.xlane.xlu0 %256 }
 0x296   :  { %v260_v45 = vmul.f32 0.0078125, %v257_v44  ;;  %v263_v46 = vmul.f32 %v261_v43, %v261_v43 }
 0x298   :  { %v262_v47 = vsub.f32 %v253_v40, %v260_v45  ;;  %265 = vadd.xlane.f32.xlu1 %v263_v46 }
 0x29a   :  { %v264_v48 = vmul.f32 %v262_v47, %v262_v47 }
 0x29c   :  { %267 = vadd.xlane.f32.xlu1 %v264_v48 }
 0x325   :  { %v266_v49 = vpop.xlane.xlu1 %265 }
 0x326   :  { %v269_v50 = vmul.f32 0.0078125, %v266_v49 }
 0x328   :  { %v271_v51 = vadd.f32 1e-05, %v269_v50 }
 0x329   :  { %v268_v52 = vpop.xlane.xlu1 %267 }
 0x32a   :  { %388 = vrsqrt.f32 %v271_v51  ;;  %v270_v53 = vmul.f32 0.0078125, %v268_v52 }
 0x32c   :  { %v272_v54 = vadd.f32 1e-05, %v270_v53 }
 0x32e   :  { %390 = vrsqrt.f32 %v272_v54 }
 0x334   :  { %v389_v55 = vpop.eup %388 }
 0x335   :  { %v275_v57 = vmul.f32 %v389_v55, %v261_v43 }
 0x337   :  { %v281_v59 = vmul.f32 %v322_v56, %v275_v57 }
 0x338   :  { %v391_v60 = vpop.eup %390 }
 0x339   :  { %v276_v61 = vmul.f32 %v391_v60, %v262_v47  ;;  %v287_v62 = vadd.f32 %v323_v58, %v281_v59 }
 0x33b   :  { %v282_v63 = vmul.f32 %v322_v56, %v276_v61  ;;  %289 = vst [vmem:[#allocation8] sm:$0xff] %v287_v62 }
 0x33d   :  { %v288_v0 = vadd.f32 %v323_v58, %v282_v63 }
 0x33f   :  { %290 = vst [vmem:[#allocation8 + $0x8] sm:$0xff] %v288_v0 }
 0x340   :  { %469 = shalt.err (!%p466_p0)
}
 0x341   :  { %s470_s12 = scalar_lea.hbm %s597_s4, 256 }
 0x342   :  { %p471_p1 = scmp.ne.s32.totalorder %s597_s4, %s470_s12  ;;  %p474_p2 = scmp.lt.u32.totalorder %s470_s12, %s597_s4 }
 0x344   :  { %p476_p3 = pnand %p474_p2, %p471_p1 }
 0x346   :  { %479 = shalt.err (!%p476_p3)
}
 0x347   :  { %302 = dma.vmem_to_hbm [thread:$0]  %s297_s9, 256, %s597_s4, [#allocation4], %s490_s1, %s490_s1, %s491_s13  }
 0x348   :  { %484 = dma.done.wait [#allocation4], 256  }
 0x349   :  { %485 = vsyncadd [#allocation4], 4294967040 }
 0x34a   :  { %306 = vsyncpa [#allocation3], 1 }
 0x34b   :  { %307 = vsyncpa [#allocation6], 1 }
 0x34c   :  { %308 = vsyncpa [#allocation4], 1 }

</bundles_post_ra>
